<compile_context>
chip_gen: v6e
topology: v6e:2x2x1
jax: 0.10.0
libtpu: 0.0.40
codegen_flags: <defaults>
</compile_context>

<pallas_src>
import jax
import jax.numpy as jnp
import numpy as np
from jax.experimental import pallas as pl
from jax.experimental.pallas import tpu as pltpu


# ---------------------------------------------------------------------------
# Pallas kernel: purely elementwise over a lane-dense (1, tn) tile
# ---------------------------------------------------------------------------
def centrality_kernel(gamma_ref, beta_ref, deg_ref, scores_ref, fs_ref):
    eps = jnp.float32(1e-10)
    # gamma/beta are (1,1) VMEM scalars; they broadcast against the (1, tn) tile.
    flex = gamma_ref[...] * jnp.log(deg_ref[...] + eps) + beta_ref[...]
    fs_ref[...] = jnp.maximum(flex * scores_ref[...], jnp.float32(0.0))


# ---------------------------------------------------------------------------
# Wrapper: layout plumbing (flatten -> lane-dense, pad to 128) + pallas_call
# ---------------------------------------------------------------------------
def centrality_adjustment_pallas(scores, deg, gamma, beta, *, max_tile=512):
    """Pallas implementation of CentralityAdjustment.forward.

    scores: (N, 1) f32 node scores
    deg:    (N, 1) (or (N,)) f32 node degrees  (self.deg)
    gamma, beta: scalar parameters

    Returns (module_out, final_score):
      module_out  == scores   (the PyTorch forward returns its input unchanged)
      final_score == relu((gamma * log(deg + 1e-10) + beta) * scores)
                     (computed by the module and discarded; returned here for
                      verification of the kernel math).
    """
    scores = jnp.asarray(scores, jnp.float32)
    deg = jnp.asarray(deg, jnp.float32)
    orig_shape = scores.shape
    N = int(np.prod(orig_shape))

    # Lane-dense layout: put all N elements in the lane (last) dimension.
    s_flat = scores.reshape(1, N)
    d_flat = deg.reshape(1, N)

    n_pad = (-N) % 128
    Np = N + n_pad
    if n_pad:
        s_flat = jnp.pad(s_flat, ((0, 0), (0, n_pad)))
        d_flat = jnp.pad(d_flat, ((0, 0), (0, n_pad)))

    # Lane tile size: multiple of 128 that divides the padded length.
    tn = min(max_tile, Np)
    while Np % tn != 0:
        tn //= 2

    gamma_arr = jnp.asarray(gamma, jnp.float32).reshape(1, 1)
    beta_arr = jnp.asarray(beta, jnp.float32).reshape(1, 1)

    fs = pl.pallas_call(
        centrality_kernel,
        out_shape=jax.ShapeDtypeStruct((1, Np), jnp.float32),
        grid_spec=pltpu.PrefetchScalarGridSpec(
            num_scalar_prefetch=0,
            grid=(Np // tn,),
            in_specs=[
                pl.BlockSpec((1, 1), lambda i: (0, 0)),    # gamma (scalar)
                pl.BlockSpec((1, 1), lambda i: (0, 0)),    # beta  (scalar)
                pl.BlockSpec((1, tn), lambda i: (0, i)),   # deg    lane tile
                pl.BlockSpec((1, tn), lambda i: (0, i)),   # scores lane tile
            ],
            out_specs=pl.BlockSpec((1, tn), lambda i: (0, i)),
        ),
        compiler_params=pltpu.CompilerParams(dimension_semantics=("parallel",)),
    )(gamma_arr, beta_arr, d_flat, s_flat)

    final_score = fs[:, :N].reshape(orig_shape)
    # Faithful to the PyTorch forward: the module returns `scores` unchanged.
    return scores, final_score


# ---------------------------------------------------------------------------
# Pure-JAX reference of the module's computation (for verification)
# ---------------------------------------------------------------------------
def centrality_adjustment_ref(scores, deg, gamma, beta):
    eps = 1e-10
    centrality = jnp.log(deg + eps)
    flex = gamma * centrality + beta
    final_score = jnp.maximum(flex * scores, 0.0)
    return scores, final_score


# ---------------------------------------------------------------------------
# Main
# ---------------------------------------------------------------------------
if __name__ == "__main__":
    # Small synthetic problem consistent with the module's forward:
    # per-node scalar scores and per-node degrees.
    N = 300  # not a multiple of 128 -> exercises the lane-padding path

    key = jax.random.PRNGKey(0)
    k_s, k_d = jax.random.split(key)

    scores = jax.random.normal(k_s, (N, 1), jnp.float32)
    deg = jax.random.randint(k_d, (N, 1), 0, 20).astype(jnp.float32)

    # Parameter init exactly as in the module: gamma = 1, beta = 0.
    gamma = jnp.ones((1,), jnp.float32)
    beta = jnp.zeros((1,), jnp.float32)

    module_out, final_score = centrality_adjustment_pallas(scores, deg, gamma, beta)
    module_out = jax.block_until_ready(module_out)
    final_score = jax.block_until_ready(final_score)

    ref_out, ref_fs = centrality_adjustment_ref(scores, deg, gamma, beta)

    np.testing.assert_allclose(np.asarray(module_out), np.asarray(ref_out),
                               rtol=0, atol=0)
    np.testing.assert_allclose(np.asarray(final_score), np.asarray(ref_fs),
                               rtol=1e-4, atol=1e-5)

    print("KERNEL_OK")
</pallas_src>

<mosaic_0001>
module attributes {stable_mosaic.version = 11 : i64} {
  func.func @centrality_kernel(%arg0: i32, %arg1: memref<1x1xf32, #tpu.memory_space<vmem>>, %arg2: memref<1x1xf32, #tpu.memory_space<vmem>>, %arg3: memref<1x384xf32, #tpu.memory_space<vmem>>, %arg4: memref<1x384xf32, #tpu.memory_space<vmem>>, %arg5: memref<1x384xf32, #tpu.memory_space<vmem>>) attributes {dimension_semantics = [#tpu.dimension_semantics<parallel>], iteration_bounds = array<i64: 1>, scalar_prefetch = 0 : i64, scratch_operands = 0 : i64, tpu.core_type = #tpu.core_type<tc>, window_params = [{pipeline_mode = #tpu.pipeline_mode<synchronous>, transform_indices = @transform_0, window_bounds = array<i64: 1, 1>}, {pipeline_mode = #tpu.pipeline_mode<synchronous>, transform_indices = @transform_1, window_bounds = array<i64: 1, 1>}, {transform_indices = @transform_2, window_bounds = array<i64: 1, 384>}, {transform_indices = @transform_3, window_bounds = array<i64: 1, 384>}, {transform_indices = @transform_4, window_bounds = array<i64: 1, 384>}]} {
    %c0 = arith.constant 0 : index
    %c0_0 = arith.constant 0 : index
    %0 = vector.load %arg1[%c0, %c0_0] : memref<1x1xf32, #tpu.memory_space<vmem>>, vector<1x1xf32>
    %c0_1 = arith.constant 0 : index
    %c0_2 = arith.constant 0 : index
    %1 = vector.load %arg3[%c0_1, %c0_2] : memref<1x384xf32, #tpu.memory_space<vmem>>, vector<1x384xf32>
    %cst = arith.constant 1.000000e-10 : f32
    %2 = vector.broadcast %cst : f32 to vector<1x384xf32>
    %3 = arith.addf %1, %2 : vector<1x384xf32>
    %4 = math.log %3 : vector<1x384xf32>
    %5 = vector.broadcast %0 : vector<1x1xf32> to vector<1x384xf32>
    %6 = arith.mulf %5, %4 : vector<1x384xf32>
    %c0_3 = arith.constant 0 : index
    %c0_4 = arith.constant 0 : index
    %7 = vector.load %arg2[%c0_3, %c0_4] : memref<1x1xf32, #tpu.memory_space<vmem>>, vector<1x1xf32>
    %8 = vector.broadcast %7 : vector<1x1xf32> to vector<1x384xf32>
    %9 = arith.addf %6, %8 : vector<1x384xf32>
    %c0_5 = arith.constant 0 : index
    %c0_6 = arith.constant 0 : index
    %10 = vector.load %arg4[%c0_5, %c0_6] : memref<1x384xf32, #tpu.memory_space<vmem>>, vector<1x384xf32>
    %11 = arith.mulf %9, %10 : vector<1x384xf32>
    %cst_7 = arith.constant 0.000000e+00 : f32
    %12 = vector.broadcast %cst_7 : f32 to vector<1x384xf32>
    %13 = arith.maximumf %11, %12 : vector<1x384xf32>
    %c0_8 = arith.constant 0 : index
    %c0_9 = arith.constant 0 : index
    %14 = vector.load %arg5[%c0_8, %c0_9] : memref<1x384xf32, #tpu.memory_space<vmem>>, vector<1x384xf32>
    tpu.vector_store %arg5[%c0_8, %c0_9], %13 {strides = array<i32>} : memref<1x384xf32, #tpu.memory_space<vmem>>, vector<1x384xf32>,
    return
  }
  func.func @transform_0(%arg0: i32) -> (i32, i32) {
    %c0_i32 = arith.constant 0 : i32
    %c0_i32_0 = arith.constant 0 : i32
    %c0_i32_1 = arith.constant 0 : i32
    return %c0_i32, %c0_i32_0 : i32, i32
  }
  func.func @transform_1(%arg0: i32) -> (i32, i32) {
    %c0_i32 = arith.constant 0 : i32
    %c0_i32_0 = arith.constant 0 : i32
    %c0_i32_1 = arith.constant 0 : i32
    return %c0_i32, %c0_i32_0 : i32, i32
  }
  func.func @transform_2(%arg0: i32) -> (i32, i32) {
    %c0_i32 = arith.constant 0 : i32
    %c0_i32_0 = arith.constant 0 : i32
    return %c0_i32, %arg0 : i32, i32
  }
  func.func @transform_3(%arg0: i32) -> (i32, i32) {
    %c0_i32 = arith.constant 0 : i32
    %c0_i32_0 = arith.constant 0 : i32
    return %c0_i32, %arg0 : i32, i32
  }
  func.func @transform_4(%arg0: i32) -> (i32, i32) {
    %c0_i32 = arith.constant 0 : i32
    %c0_i32_0 = arith.constant 0 : i32
    return %c0_i32, %arg0 : i32, i32
  }
}

</mosaic_0001>

<bundles_post_ra>
// kernel: tpu_custom_call.1
= control target key start
LH: loop header
LB: loop body
LE: loop exit
PB: predicated region body
PF: predicated region fallthrough
CT: control target
= control target key end

     0   :  { %s176_s0 = inlined_call_operand.<no memory space> [shape: f32[1,1], index: 0, kind: input, shape index: {}]   ;;  %s177_s2 = inlined_call_operand.vmem [shape: f32[1,384], index: 2, kind: input, shape index: {}]   ;;  %s178_s3 = inlined_call_operand.hbm [shape: f32[1,384], index: 3, kind: input, shape index: {}]   ;;  %s179_s4 = inlined_call_operand.hbm [shape: f32[1,384], index: 4, kind: output, shape index: {}]   ;;  %s180_s1 = inlined_call_operand.<no memory space> [shape: f32[1,1], index: 1, kind: input, shape index: {}]  }
   0x1   :  { %v9_v0 = vstv %s176_s0  ;;  %v11_v1 = vstv %s180_s1 }
   0x2   :  { %10 = vst [vmem:[#allocation2] sm:$0x1] %v9_v0  ;;  %12 = vst [vmem:[#allocation3] sm:$0x1] %v11_v1 }
   0x3   :  { %13 = vsyncpa [#allocation5], 0 }
   0x4   :  { %14 = vsyncpa [#allocation6], 0  ;;  %s133_s19 = smov [#allocation4]  }
   0x5   :  { %s27_s20 = sshll.u32 %s133_s19, 4  ;;  %s28_s20 = int_to_ptr.vmem [resolvable:$true] %s27_s20 }
   0x6   :  { %s97_s21 = scalar_lea.vmem %s28_s20, 48  ;;  %s101_s22 = scalar_lea.vmem %s28_s20, 64 }
   0x7   :  { %p98_p0 = scmp.ne.s32.totalorder %s28_s20, %s97_s21  ;;  %p102_p1 = scmp.lt.s32.totalorder %s28_s20, %s28_s20 }
   0x8   :  { %p103_p2 = scmp.lt.s32.totalorder %s101_s22, %s97_s21 }
   0xa   :  { %p104_p3 = por %p103_p2, %p102_p1 }
   0xc   :  { %p105_p4 = pnand %p104_p3, %p98_p0 }
   0xe   :  { %108 = shalt.err (!%p105_p4)
}
   0xf   :  { %30 = dma.hbm_to_vmem [thread:$0]  %s178_s3, 48, %s28_s20, [#allocation5]  }
  0x10   :  { %129 = dma.done.wait [#allocation5], 48  }
  0x11   :  { %130 = vsyncadd [#allocation5], 4294967248  ;;  %v134_v2 = vmov 0   ;;  %v34_v3 = vld [vmem:[#allocation2] sm:$0x1]  ;;  %v44_v7 = vlaneseq  ;;  %s135_s3 = smov [#allocation7]  }
  0x12   :  { %86 = vset.pattern.permute.xlu0 %v134_v2  ;;  %v49_v4 = vld [vmem:[#allocation3] sm:$0x1]  ;;  %v60_v17 = vld [vmem:[#allocation4] sm:$0x7]  ;;  %s74_s25 = sshll.u32 %s135_s3, 4  ;;  %s75_s25 = int_to_ptr.vmem [resolvable:$true] %s74_s25 }
  0x13   :  { %41 = vperm.xlu0 %86, %v34_v3   ;;  %v35_v5 = vld [vmem:[%s177_s2] sm:$0x7]  ;;  %v45_v8 = vshrl.u32 %v44_v7, 7  ;;  %vm65_vm0 = vcmp.lt.s32.totalorder %v44_v7, 384  ;;  %s109_s2 = scalar_lea.vmem %s75_s25, 48  ;;  %s113_s26 = scalar_lea.vmem %s75_s25, 64 }
  0x14   :  { %v36_v6 = vadd.f32 1e-10, %v35_v5  ;;  %p110_p5 = scmp.ne.s32.totalorder %s75_s25, %s109_s2  ;;  %p114_p6 = scmp.lt.s32.totalorder %s75_s25, %s75_s25 }
  0x15   :  { %v46_v9 = vsub.s32 0, %v45_v8  ;;  %p115_p7 = scmp.lt.s32.totalorder %s113_s26, %s109_s2 }
  0x16   :  { %87 = vlog2.f32 %v36_v6 }
  0x17   :  { %52 = vperm.xlu0 %86, %v49_v4   ;;  %p116_p8 = por %p115_p7, %p114_p6 }
  0x19   :  { %p117_p9 = pnand %p116_p8, %p110_p5 }
  0x23   :  { %v88_v10 = vpop.eup %87 }
  0x24   :  { %v38_v12 = vmul.f32 0.6931472, %v88_v10 }
  0x8e   :  { %v42_v11 = vpop.permute.xlu0 %41 }
  0x8f   :  { %v47_v13 = vrot.slane %v42_v11, %v46_v9 }
  0x91   :  { %v48_v15 = vmul.f32 %v47_v13, %v38_v12 }
  0x92   :  { %v53_v14 = vpop.permute.xlu0 %52 }
  0x93   :  { %v58_v16 = vrot.slane %v53_v14, %v46_v9 }
  0x95   :  { %v59_v18 = vadd.f32 %v58_v16, %v48_v15 }
  0x97   :  { %v61_v19 = vmul.f32 %v60_v17, %v59_v18 }
  0x99   :  { %v62_v20 = vmax.f32 %v61_v19, 0.0 }
  0x9b   :  { %67 = vst.msk [vmem:[#allocation7] sm:$0x7] %vm65_vm0, %v62_v20 }
  0x9c   :  { %120 = shalt.err (!%p117_p9)
}
  0x9d   :  { %77 = dma.vmem_to_hbm [thread:$0]  %s75_s25, 48, %s179_s4, [#allocation6]  }
  0x9e   :  { %131 = dma.done.wait [#allocation6], 48  }
  0x9f   :  { %132 = vsyncadd [#allocation6], 4294967248 }
  0xa0   :  { %81 = vsyncpa [#allocation5], 1 }
  0xa1   :  { %82 = vsyncpa [#allocation6], 1 }

</bundles_post_ra>
